<compile_context>
chip_gen: v7x
topology: tpu7x:2x2x1
jax: 0.10.0
libtpu: 0.0.40
codegen_flags: <defaults>
</compile_context>

<pallas_src>
import functools

import jax
import jax.numpy as jnp
from jax.experimental import pallas as pl
from jax.experimental.pallas import tpu as pltpu

F_HALF = 41            # per-input feature dim
F_DIM = 82             # concatenated feature dim (41 + 41)
O_DIM = 82             # logical output dim
H_DIM = 128            # hidden dim
MAX_TB = 2048          # max rows per grid step (sweep 1024-4096 if desired)
MIN_PALLAS_BATCH = 512 # below this, plain XLA fusion wins


def _round_up(n: int, m: int) -> int:
    return ((n + m - 1) // m) * m


def mlp_kernel(x1_ref, x2_ref, w1_ref, b1_ref, w2_ref, b2_ref, s1_ref, s2_ref):
    # x1, x2: [TB, 41]; w1: [82, 128]; b1: [1, 128]; w2: [128, 82]; b2: [1, 82]
    # s1, s2: [TB, 41]
    # Concat in VMEM (XLU lane shuffle) so layer 1 is one K=82 MXU pass instead
    # of two under-filled K=41 passes.
    x = jnp.concatenate([x1_ref[...], x2_ref[...]], axis=-1)          # [TB, 82]
    h = jnp.dot(x, w1_ref[...], preferred_element_type=jnp.float32) + b1_ref[...]
    h = jnp.maximum(h, 0.0)                                           # ReLU
    s = (jnp.dot(h.astype(w2_ref.dtype), w2_ref[...],
                 preferred_element_type=jnp.float32) + b2_ref[...])   # [TB, 82]
    s1_ref[...] = s[:, :F_HALF].astype(s1_ref.dtype)
    s2_ref[...] = s[:, F_HALF:].astype(s2_ref.dtype)


@functools.partial(jax.jit, static_argnames=("use_pallas", "use_bf16"))
def c670_sf_forward(c620_w4, c660_w4, params, *, use_pallas=None, use_bf16=False):
    """Reproduces C670_SF.forward: concat -> Linear -> ReLU -> Linear -> split."""
    w1, b1, w2, b2 = params
    B = c620_w4.shape[0]

    if use_pallas is None:
        use_pallas = B >= MIN_PALLAS_BATCH

    if not use_pallas:
        # Tiny batches: the XLA-fused MLP beats any custom kernel.
        x = jnp.concatenate([c620_w4, c660_w4], axis=-1)
        s = jnp.maximum(x @ w1 + b1.reshape(1, -1), 0.0) @ w2 + b2.reshape(1, -1)
        return s[:, :F_HALF], s[:, F_HALF:]

    cdt = jnp.bfloat16 if use_bf16 else jnp.float32
    x1 = c620_w4.astype(cdt)
    x2 = c660_w4.astype(cdt)
    w1c = w1.astype(cdt)                              # [82, 128]
    w2c = w2.astype(cdt)                              # [128, 82]
    b1c = b1.reshape(1, H_DIM).astype(jnp.float32)    # [1, 128]
    b2c = b2.reshape(1, O_DIM).astype(jnp.float32)    # [1, 82]

    # Largest tile that fits comfortably in VMEM, with >= 2 grid steps when B
    # allows it so both v7x TensorCores get work (dimension_semantics parallel).
    half = _round_up(max(1, (B + 1) // 2), 8)
    tb = max(8, min(MAX_TB, half))
    grid = (pl.cdiv(B, tb),)

    isz = jnp.dtype(cdt).itemsize
    cost = pl.CostEstimate(
        flops=2 * B * (F_DIM * H_DIM + H_DIM * O_DIM),
        transcendentals=0,
        bytes_accessed=(isz * (2 * B * F_HALF + F_DIM * H_DIM + H_DIM * O_DIM)
                        + 4 * (H_DIM + O_DIM)          # biases
                        + 4 * B * O_DIM),              # two f32 [B,41] outputs
    )

    s1, s2 = pl.pallas_call(
        mlp_kernel,
        out_shape=(jax.ShapeDtypeStruct((B, F_HALF), jnp.float32),
                   jax.ShapeDtypeStruct((B, F_HALF), jnp.float32)),
        grid=grid,
        in_specs=[
            pl.BlockSpec((tb, F_HALF), lambda i: (i, 0)),     # x1 (row tile)
            pl.BlockSpec((tb, F_HALF), lambda i: (i, 0)),     # x2 (row tile)
            pl.BlockSpec((F_DIM, H_DIM), lambda i: (0, 0)),   # w1 (resident)
            pl.BlockSpec((1, H_DIM), lambda i: (0, 0)),       # b1 (resident)
            pl.BlockSpec((H_DIM, O_DIM), lambda i: (0, 0)),   # w2 (resident)
            pl.BlockSpec((1, O_DIM), lambda i: (0, 0)),       # b2 (resident)
        ],
        out_specs=(pl.BlockSpec((tb, F_HALF), lambda i: (i, 0)),
                   pl.BlockSpec((tb, F_HALF), lambda i: (i, 0))),
        compiler_params=pltpu.CompilerParams(
            dimension_semantics=("parallel",)),
        cost_estimate=cost,
    )(x1, x2, w1c, b1c, w2c, b2c)

    return s1, s2


def init_params(key):
    """Deterministic init mimicking nn.Linear default (uniform +-1/sqrt(fan_in))."""
    k1, k2, k3, k4 = jax.random.split(key, 4)
    lim1 = 1.0 / jnp.sqrt(jnp.float32(F_DIM))
    lim2 = 1.0 / jnp.sqrt(jnp.float32(H_DIM))
    w1 = jax.random.uniform(k1, (F_DIM, H_DIM), jnp.float32, -lim1, lim1)
    b1 = jax.random.uniform(k2, (1, H_DIM), jnp.float32, -lim1, lim1)
    w2 = jax.random.uniform(k3, (H_DIM, O_DIM), jnp.float32, -lim2, lim2)
    b2 = jax.random.uniform(k4, (1, O_DIM), jnp.float32, -lim2, lim2)
    return w1, b1, w2, b2


if __name__ == "__main__":
    key = jax.random.PRNGKey(0)
    kp, kx1, kx2 = jax.random.split(key, 3)
    params = init_params(kp)

    B = 8
    c620_w4 = jax.random.normal(kx1, (B, F_HALF), jnp.float32)
    c660_w4 = jax.random.normal(kx2, (B, F_HALF), jnp.float32)

    # Force the Pallas path at this tiny test batch (the auto path would take
    # the small-batch XLA bypass below MIN_PALLAS_BATCH rows).
    s1, s2 = c670_sf_forward(c620_w4, c660_w4, params, use_pallas=True)
    jax.block_until_ready((s1, s2))

    # sanity check against plain-JAX reference of the PyTorch module
    w1, b1, w2, b2 = params
    x = jnp.concatenate([c620_w4, c660_w4], axis=-1)
    ref = jnp.maximum(x @ w1 + b1, 0.0) @ w2 + b2
    assert s1.shape == (B, F_HALF) and s2.shape == (B, F_HALF)
    assert jnp.allclose(s1, ref[:, :F_HALF], atol=1e-5)
    assert jnp.allclose(s2, ref[:, F_HALF:], atol=1e-5)

    # also exercise the auto (small-batch bypass) path once
    a1, a2 = c670_sf_forward(c620_w4, c660_w4, params)
    jax.block_until_ready((a1, a2))
    assert jnp.allclose(a1, ref[:, :F_HALF], atol=1e-5)
    assert jnp.allclose(a2, ref[:, F_HALF:], atol=1e-5)

    print("KERNEL_OK")
</pallas_src>

<mosaic_0001>
module attributes {stable_mosaic.version = 11 : i64} {
  func.func @mlp_kernel(%arg0: i32, %arg1: memref<8x41xf32, #tpu.memory_space<vmem>>, %arg2: memref<8x41xf32, #tpu.memory_space<vmem>>, %arg3: memref<82x128xf32, #tpu.memory_space<vmem>>, %arg4: memref<1x128xf32, #tpu.memory_space<vmem>>, %arg5: memref<128x82xf32, #tpu.memory_space<vmem>>, %arg6: memref<1x82xf32, #tpu.memory_space<vmem>>, %arg7: memref<8x41xf32, #tpu.memory_space<vmem>>, %arg8: memref<8x41xf32, #tpu.memory_space<vmem>>) attributes {dimension_semantics = [#tpu.dimension_semantics<parallel>], iteration_bounds = array<i64: 1>, scalar_prefetch = 0 : i64, scratch_operands = 0 : i64, tpu.core_type = #tpu.core_type<tc>, window_params = [{transform_indices = @transform_0, window_bounds = array<i64: 8, 41>}, {transform_indices = @transform_1, window_bounds = array<i64: 8, 41>}, {pipeline_mode = #tpu.pipeline_mode<synchronous>, transform_indices = @transform_2, window_bounds = array<i64: 82, 128>}, {pipeline_mode = #tpu.pipeline_mode<synchronous>, transform_indices = @transform_3, window_bounds = array<i64: 1, 128>}, {pipeline_mode = #tpu.pipeline_mode<synchronous>, transform_indices = @transform_4, window_bounds = array<i64: 128, 82>}, {pipeline_mode = #tpu.pipeline_mode<synchronous>, transform_indices = @transform_5, window_bounds = array<i64: 1, 82>}, {transform_indices = @transform_6, window_bounds = array<i64: 8, 41>}, {transform_indices = @transform_7, window_bounds = array<i64: 8, 41>}]} {
    %c0 = arith.constant 0 : index
    %c0_0 = arith.constant 0 : index
    %0 = vector.load %arg1[%c0, %c0_0] : memref<8x41xf32, #tpu.memory_space<vmem>>, vector<8x41xf32>
    %c0_1 = arith.constant 0 : index
    %c0_2 = arith.constant 0 : index
    %1 = vector.load %arg2[%c0_1, %c0_2] : memref<8x41xf32, #tpu.memory_space<vmem>>, vector<8x41xf32>
    %2 = tpu.concatenate %0, %1 in 1 : vector<8x41xf32>, vector<8x41xf32> -> vector<8x82xf32>
    %c0_3 = arith.constant 0 : index
    %c0_4 = arith.constant 0 : index
    %3 = vector.load %arg3[%c0_3, %c0_4] : memref<82x128xf32, #tpu.memory_space<vmem>>, vector<82x128xf32>
    %cst = arith.constant dense<0.000000e+00> : vector<8x128xf32>
    %4 = tpu.matmul %2, %3, %cst {dimension_numbers = #tpu.dot_dimension_numbers<[1], [0], [0], [1], [0, 0, 1, 1], [], []>} : vector<8x82xf32>, vector<82x128xf32>, vector<8x128xf32> -> vector<8x128xf32>
    %c0_5 = arith.constant 0 : index
    %c0_6 = arith.constant 0 : index
    %5 = vector.load %arg4[%c0_5, %c0_6] : memref<1x128xf32, #tpu.memory_space<vmem>>, vector<1x128xf32>
    %6 = vector.broadcast %5 : vector<1x128xf32> to vector<8x128xf32>
    %7 = arith.addf %4, %6 : vector<8x128xf32>
    %cst_7 = arith.constant 0.000000e+00 : f32
    %8 = vector.broadcast %cst_7 : f32 to vector<8x128xf32>
    %9 = arith.maximumf %7, %8 : vector<8x128xf32>
    %c0_8 = arith.constant 0 : index
    %c0_9 = arith.constant 0 : index
    %10 = vector.load %arg5[%c0_8, %c0_9] : memref<128x82xf32, #tpu.memory_space<vmem>>, vector<128x82xf32>
    %cst_10 = arith.constant dense<0.000000e+00> : vector<8x82xf32>
    %11 = tpu.matmul %9, %10, %cst_10 {dimension_numbers = #tpu.dot_dimension_numbers<[1], [0], [0], [1], [0, 0, 1, 1], [], []>} : vector<8x128xf32>, vector<128x82xf32>, vector<8x82xf32> -> vector<8x82xf32>
    %c0_11 = arith.constant 0 : index
    %c0_12 = arith.constant 0 : index
    %12 = vector.load %arg6[%c0_11, %c0_12] : memref<1x82xf32, #tpu.memory_space<vmem>>, vector<1x82xf32>
    %13 = vector.broadcast %12 : vector<1x82xf32> to vector<8x82xf32>
    %14 = arith.addf %11, %13 : vector<8x82xf32>
    %15 = vector.extract_strided_slice %14 {offsets = [0, 0], sizes = [8, 41], strides = [1, 1]} : vector<8x82xf32> to vector<8x41xf32>
    %c0_13 = arith.constant 0 : index
    %c0_14 = arith.constant 0 : index
    %16 = vector.load %arg7[%c0_13, %c0_14] : memref<8x41xf32, #tpu.memory_space<vmem>>, vector<8x41xf32>
    tpu.vector_store %arg7[%c0_13, %c0_14], %15 {strides = array<i32>} : memref<8x41xf32, #tpu.memory_space<vmem>>, vector<8x41xf32>,
    %17 = vector.extract_strided_slice %14 {offsets = [0, 41], sizes = [8, 41], strides = [1, 1]} : vector<8x82xf32> to vector<8x41xf32>
    %c0_15 = arith.constant 0 : index
    %c0_16 = arith.constant 0 : index
    %18 = vector.load %arg8[%c0_15, %c0_16] : memref<8x41xf32, #tpu.memory_space<vmem>>, vector<8x41xf32>
    tpu.vector_store %arg8[%c0_15, %c0_16], %17 {strides = array<i32>} : memref<8x41xf32, #tpu.memory_space<vmem>>, vector<8x41xf32>,
    return
  }
  func.func @transform_0(%arg0: i32) -> (i32, i32) {
    %c0_i32 = arith.constant 0 : i32
    %c0_i32_0 = arith.constant 0 : i32
    return %arg0, %c0_i32 : i32, i32
  }
  func.func @transform_1(%arg0: i32) -> (i32, i32) {
    %c0_i32 = arith.constant 0 : i32
    %c0_i32_0 = arith.constant 0 : i32
    return %arg0, %c0_i32 : i32, i32
  }
  func.func @transform_2(%arg0: i32) -> (i32, i32) {
    %c0_i32 = arith.constant 0 : i32
    %c0_i32_0 = arith.constant 0 : i32
    %c0_i32_1 = arith.constant 0 : i32
    return %c0_i32, %c0_i32_0 : i32, i32
  }
  func.func @transform_3(%arg0: i32) -> (i32, i32) {
    %c0_i32 = arith.constant 0 : i32
    %c0_i32_0 = arith.constant 0 : i32
    %c0_i32_1 = arith.constant 0 : i32
    return %c0_i32, %c0_i32_0 : i32, i32
  }
  func.func @transform_4(%arg0: i32) -> (i32, i32) {
    %c0_i32 = arith.constant 0 : i32
    %c0_i32_0 = arith.constant 0 : i32
    %c0_i32_1 = arith.constant 0 : i32
    return %c0_i32, %c0_i32_0 : i32, i32
  }
  func.func @transform_5(%arg0: i32) -> (i32, i32) {
    %c0_i32 = arith.constant 0 : i32
    %c0_i32_0 = arith.constant 0 : i32
    %c0_i32_1 = arith.constant 0 : i32
    return %c0_i32, %c0_i32_0 : i32, i32
  }
  func.func @transform_6(%arg0: i32) -> (i32, i32) {
    %c0_i32 = arith.constant 0 : i32
    %c0_i32_0 = arith.constant 0 : i32
    return %arg0, %c0_i32 : i32, i32
  }
  func.func @transform_7(%arg0: i32) -> (i32, i32) {
    %c0_i32 = arith.constant 0 : i32
    %c0_i32_0 = arith.constant 0 : i32
    return %arg0, %c0_i32 : i32, i32
  }
}

</mosaic_0001>

<bundles_post_ra>
// kernel: c670_sf_forward.1
= control target key start
LH: loop header
LB: loop body
LE: loop exit
PB: predicated region body
PF: predicated region fallthrough
CT: control target
= control target key end

     0   :  { %13 = vsyncpa [#allocation3], 0  ;;  %s446_s30 = smov 41   ;;  %v447_v3 = vmov 0.0|0.0   ;;  %vm448_vm0 = vmmov 0   ;;  %v449_v7 = vmov 0.0   ;;  %s626_s0 = inlined_call_operand.vmem [shape: f32[8,41], index: 0, kind: input, shape index: {}]   ;;  %s627_s1 = inlined_call_operand.vmem [shape: f32[8,41], index: 1, kind: input, shape index: {}]   ;;  %s628_s2 = inlined_call_operand.vmem [shape: f32[82,128], index: 2, kind: input, shape index: {}]   ;;  %s629_s3 = inlined_call_operand.vmem [shape: f32[1,128], index: 3, kind: input, shape index: {}]   ;;  %s630_s4 = inlined_call_operand.vmem [shape: f32[128,82], index: 4, kind: input, shape index: {}]   ;;  %s631_s5 = inlined_call_operand.vmem [shape: f32[1,82], index: 5, kind: input, shape index: {}]   ;;  %s632_s6 = inlined_call_operand.hbm [shape: f32[8,41], index: 6, kind: output, shape index: {0}]   ;;  %s633_s7 = inlined_call_operand.hbm [shape: f32[8,41], index: 7, kind: output, shape index: {1}]  }
   0x1   :  { %v28_v0 = vld [vmem:[%s627_s1] sm:$0xff]  ;;  %v36_v2 = vld [vmem:[%s628_s2 + $0x8] sm:$0xff]  ;;  %352 = vmatprep.subr.bf16.mxu0 %v447_v3  ;;  %v37_v5 = vld [vmem:[%s628_s2 + $0x10] sm:$0xff]  ;;  %314 = vmatprep.mubr.msk.f32.mxu0 %vm448_vm0, %v449_v7 }
   0x2   :  { %v35_v1 = vld [vmem:[%s628_s2] sm:$0xff]  ;;  %30 = vrot.lane.b32.xlu0 %v28_v0, %s446_s30  ;;  %v38_v6 = vld [vmem:[%s628_s2 + $0x18] sm:$0xff]  ;;  %367 = vmatprep.subr.bf16.mxu1 %v447_v3  ;;  %v40_v10 = vld [vmem:[%s628_s2 + $0x28] sm:$0xff] }
   0x3   :  { %v353_v4 = vpack.c.bf16 %v36_v2, %v35_v1  ;;  %v356_v8 = vpack.c.bf16 %v38_v6, %v37_v5  ;;  %v39_v9 = vld [vmem:[%s628_s2 + $0x20] sm:$0xff]  ;;  %349 = vmatprep.mubr.msk.f32.mxu1 %vm448_vm0, %v449_v7  ;;  %v133_v12 = vld [vmem:[%s630_s4 + $0x8] sm:$0xff]  ;;  %v134_v14 = vld [vmem:[%s630_s4 + $0x10] sm:$0xff] }
   0x4   :  { %v132_v11 = vld [vmem:[%s630_s4] sm:$0xff]  ;;  %v135_v15 = vld [vmem:[%s630_s4 + $0x18] sm:$0xff]  ;;  %v359_v16 = vpack.c.bf16 %v40_v10, %v39_v9  ;;  %v41_v17 = vld [vmem:[%s628_s2 + $0x30] sm:$0xff] }
   0x5   :  { %354 = vmatpush3.bf16.msra.mxu0 %v353_v4  ;;  %v368_v13 = vpack.c.bf16 %v133_v12, %v132_v11  ;;  %v371_v18 = vpack.c.bf16 %v135_v15, %v134_v14  ;;  %v42_v19 = vld [vmem:[%s628_s2 + $0x38] sm:$0xff]  ;;  %v136_v20 = vld [vmem:[%s630_s4 + $0x20] sm:$0xff]  ;;  %v137_v21 = vld [vmem:[%s630_s4 + $0x28] sm:$0xff] }
   0x6   :  { %355 = vmatprep.subr.bf16.mxu0 %v447_v3 }
   0x7   :  { %369 = vmatpush3.bf16.msra.mxu1 %v368_v13 }
   0x8   :  { %370 = vmatprep.subr.bf16.mxu1 %v447_v3 }
   0x9   :  { %357 = vmatpush3.bf16.msra.mxu0 %v356_v8 }
   0xa   :  { %358 = vmatprep.subr.bf16.mxu0 %v447_v3 }
   0xb   :  { %14 = vsyncpa [#allocation5], 0  ;;  %v362_v22 = vpack.c.bf16 %v42_v19, %v41_v17  ;;  %v43_v23 = vld [vmem:[%s628_s2 + $0x40] sm:$0xff]  ;;  %372 = vmatpush3.bf16.msra.mxu1 %v371_v18  ;;  %v374_v24 = vpack.c.bf16 %v137_v21, %v136_v20  ;;  %v44_v25 = vld [vmem:[%s628_s2 + $0x48] sm:$0xff]  ;;  %vm57_vm1 = vcmask 1041408   ;;  %vm33_vm2 = vcmask 334848  }
   0xc   :  { %373 = vmatprep.subr.bf16.mxu1 %v447_v3  ;;  %v138_v26 = vld [vmem:[%s630_s4 + $0x30] sm:$0xff]  ;;  %v139_v27 = vld [vmem:[%s630_s4 + $0x38] sm:$0xff]  ;;  %v365_v28 = vpack.c.bf16 %v44_v25, %v43_v23  ;;  %v140_v30 = vld [vmem:[%s630_s4 + $0x40] sm:$0xff]  ;;  %vm53_vm3 = vcmask 670720   ;;  %s450_s13 = smov [#allocation2]  }
   0xd   :  { %360 = vmatpush3.bf16.msra.mxu0 %v359_v16  ;;  %v377_v29 = vpack.c.bf16 %v139_v27, %v138_v26  ;;  %v141_v31 = vld [vmem:[%s630_s4 + $0x48] sm:$0xff]  ;;  %v45_v33 = vld [vmem:[%s628_s2 + $0x50] sm:$0x3]  ;;  %v143_v35 = vld [vmem:[%s630_s4 + $0x58] sm:$0xff]  ;;  %s237_s14 = sshll.u32 %s450_s13, 4  ;;  %s238_s14 = int_to_ptr.vmem [resolvable:$true] %s237_s14 }
   0xe   :  { %361 = vmatprep.subr.bf16.mxu0 %v447_v3  ;;  %v380_v32 = vpack.c.bf16 %v141_v31, %v140_v30  ;;  %v142_v34 = vld [vmem:[%s630_s4 + $0x50] sm:$0xff]  ;;  %v144_v37 = vld [vmem:[%s630_s4 + $0x60] sm:$0xff]  ;;  %v145_v38 = vld [vmem:[%s630_s4 + $0x68] sm:$0xff]  ;;  %p403_p1 = scmp.lt.s32.totalorder %s238_s14, %s238_s14 }
   0xf   :  { %375 = vmatpush3.bf16.msra.mxu1 %v374_v24  ;;  %v383_v36 = vpack.c.bf16 %v143_v35, %v142_v34  ;;  %v386_v39 = vpack.c.bf16 %v145_v38, %v144_v37  ;;  %v27_v40 = vld [vmem:[%s626_s0] sm:$0xff]  ;;  %v146_v43 = vld [vmem:[%s630_s4 + $0x70] sm:$0xff]  ;;  %v147_v44 = vld [vmem:[%s630_s4 + $0x78] sm:$0xff]  ;;  %s451_s4 = smov 87  }
  0x10   :  { %376 = vmatprep.subr.bf16.mxu1 %v447_v3  ;;  %v389_v45 = vpack.c.bf16 %v147_v44, %v146_v43  ;;  %v259_v46 = vld [vmem:[%s629_s3] ss:$0 sm:$0xff]  ;;  %s398_s3 = scalar_lea.vmem %s238_s14, 128 }
  0x11   :  { %363 = vmatpush3.bf16.msra.mxu0 %v362_v22  ;;  %v262_v51 = vld [vmem:[%s631_s5] ss:$0 sm:$0xff]  ;;  %p399_p0 = scmp.ne.s32.totalorder %s238_s14, %s398_s3  ;;  %p404_p2 = scmp.lt.s32.totalorder %s398_s3, %s398_s3 }
  0x12   :  { %364 = vmatprep.subr.bf16.mxu0 %v447_v3 }
  0x13   :  { %378 = vmatpush3.bf16.msra.mxu1 %v377_v29  ;;  %p405_p3 = por %p404_p2, %p403_p1 }
  0x14   :  { %379 = vmatprep.subr.bf16.mxu1 %v447_v3 }
  0x15   :  { %366 = vmatpush3.bf16.msra.mxu0 %v365_v28  ;;  %p406_p4 = pnand %p405_p3, %p399_p0 }
  0x16   :  { %312 = vmatprep.subr.mxu0 %v449_v7 }
  0x17   :  { %381 = vmatpush3.bf16.msra.mxu1 %v380_v32 }
  0x18   :  { %382 = vmatprep.subr.bf16.mxu1 %v447_v3 }
  0x19   :  { %313 = vmatpush3.msk.msra.mxu0 %vm57_vm1, %v45_v33 }
  0x1b   :  { %384 = vmatpush3.bf16.msra.mxu1 %v383_v36 }
  0x1c   :  { %385 = vmatprep.subr.bf16.mxu1 %v447_v3 }
  0x1f   :  { %387 = vmatpush3.bf16.msra.mxu1 %v386_v39 }
  0x20   :  { %388 = vmatprep.subr.bf16.mxu1 %v447_v3 }
  0x23   :  { %390 = vmatpush3.bf16.msra.mxu1 %v389_v45 }
  0x74   :  { %v31_v41 = vpop.permute.xlu0 %30 }
  0x75   :  { %v34_v42 = vsel %vm33_vm2, %v27_v40, %v31_v41 }
  0x76   :  { %315 = vmatmul.mubr.msk.f32.vlgmr.msra.gmra.mrb[0].mxu0 %vm53_vm3, %v34_v42 }
 0x149   :  { %v127_v47 = vpop.f32.mrb[0].mxu0 }
 0x14a   :  { %v128_v48 = vadd.f32 %v259_v46, %v127_v47  ;;  %v316_v49 = vpop.f32.mrb[1].mxu0 }
 0x14c   :  { %v131_v50 = vmax.f32 %v128_v48, 0.0 }
 0x14e   :  { %350 = vmatmul.mubr.f32.vlgmr.msra.gmra.mrb[0].mxu1 %v131_v50 }
 0x221   :  { %v221_v52 = vpop.f32.mrb[0].mxu1 }
 0x222   :  { %v222_v53 = vadd.f32 %v262_v51, %v221_v52  ;;  %v351_v54 = vpop.f32.mrb[1].mxu1 }
 0x224   :  { %225 = vst.msk [vmem:[#allocation2] sm:$0xff] %vm33_vm2, %v222_v53  ;;  %227 = vrot.lane.b32.xlu0 %v222_v53, %s451_s4 }
 0x225   :  { %409 = shalt.err (!%p406_p4)
}
 0x226   :  { %s410_s5 = scalar_lea.hbm %s632_s6, 128 }
 0x227   :  { %p411_p5 = scmp.ne.s32.totalorder %s632_s6, %s410_s5  ;;  %p414_p6 = scmp.lt.u32.totalorder %s410_s5, %s632_s6 }
 0x229   :  { %p416_p7 = pnand %p414_p6, %p411_p5 }
 0x22b   :  { %419 = shalt.err (!%p416_p7)
}
 0x22c   :  { %240 = dma.vmem_to_hbm [thread:$0]  %s238_s14, 128, %s632_s6, [#allocation3]  }
 0x22d   :  { %s452_s23 = smov [#allocation4]  }
 0x22e   :  { %s247_s24 = sshll.u32 %s452_s23, 4  ;;  %s248_s24 = int_to_ptr.vmem [resolvable:$true] %s247_s24 }
 0x22f   :  { %s420_s25 = scalar_lea.vmem %s248_s24, 128  ;;  %p425_p9 = scmp.lt.s32.totalorder %s248_s24, %s248_s24 }
 0x230   :  { %p421_p8 = scmp.ne.s32.totalorder %s248_s24, %s420_s25  ;;  %p426_p10 = scmp.lt.s32.totalorder %s420_s25, %s420_s25 }
 0x232   :  { %p427_p11 = por %p426_p10, %p425_p9 }
 0x234   :  { %p428_p12 = pnand %p427_p11, %p421_p8 }
 0x296   :  { %v228_v55 = vpop.permute.xlu0 %227 }
 0x297   :  { %230 = vst.msk [vmem:[#allocation4] sm:$0xff] %vm33_vm2, %v228_v55 }
 0x298   :  { %431 = shalt.err (!%p428_p12)
}
 0x299   :  { %s432_s27 = scalar_lea.hbm %s633_s7, 128 }
 0x29a   :  { %p433_p13 = scmp.ne.s32.totalorder %s633_s7, %s432_s27  ;;  %p436_p0 = scmp.lt.u32.totalorder %s432_s27, %s633_s7 }
 0x29c   :  { %p438_p1 = pnand %p436_p0, %p433_p13 }
 0x29e   :  { %441 = shalt.err (!%p438_p1)
}
 0x29f   :  { %250 = dma.vmem_to_hbm [thread:$0]  %s248_s24, 128, %s633_s7, [#allocation5]  }
 0x2a0   :  { %442 = dma.done.wait [#allocation3], 128  }
 0x2a1   :  { %443 = vsyncadd [#allocation3], 4294967168 }
 0x2a2   :  { %444 = dma.done.wait [#allocation5], 128  }
 0x2a3   :  { %445 = vsyncadd [#allocation5], 4294967168 }
 0x2a4   :  { %257 = vsyncpa [#allocation3], 1 }
 0x2a5   :  { %258 = vsyncpa [#allocation5], 1 }

</bundles_post_ra>
